<compile_context>
chip_gen: v6e
topology: v6e:2x2x1
jax: 0.10.0
libtpu: 0.0.40
codegen_flags: <defaults>
</compile_context>

<pallas_src>
import jax
import jax.numpy as jnp
from jax import lax
from jax.experimental import pallas as pl
from jax.experimental.pallas import tpu as pltpu


def _make_embed_ln_kernel(TS, CHUNK, S):
    """Kernel for one (TS, D) row tile, gathered/processed in CHUNK-row pieces."""
    n_chunks = TS // CHUNK

    def kernel(ids_ref,                      # SMEM scalar prefetch: (B*S,) int32
               tok_hbm,                      # HBM (pl.ANY): (vocab, D)
               pos_ref,                      # VMEM: (TS, D) contiguous positions
               gamma_ref, beta_ref,          # VMEM: (1, D) each
               out_ref,                      # VMEM: (TS, D)
               gbuf0, gbuf1,                 # VMEM gather buffers: (CHUNK, D) each
               sems):                        # DMA sems: (2,) — one per slot
        j = pl.program_id(0)                 # row-tile index (outer)
        b = pl.program_id(1)                 # batch index (inner)
        flat0 = b * S + j * TS               # base into flattened ids
        bufs = (gbuf0, gbuf1)

        def issue(c, slot):
            # CHUNK row-gather DMAs in flight, all signalling the slot's sem.
            base = flat0 + c * CHUNK
            buf = bufs[slot]
            for r in range(CHUNK):
                tid = ids_ref[base + r]
                pltpu.make_async_copy(
                    tok_hbm.at[pl.ds(tid, 1), :],
                    buf.at[pl.ds(r, 1), :],
                    sems.at[slot]).start()

        def wait(slot):
            # Single wait per slot: descriptor byte count == CHUNK * D * itemsize,
            # i.e. exactly the sum of the CHUNK row copies that signalled sems[slot].
            pltpu.make_async_copy(
                tok_hbm.at[pl.ds(0, CHUNK), :],
                bufs[slot],
                sems.at[slot]).wait()

        # LayerNorm affine params, loaded once per tile (resident across grid).
        gamma = gamma_ref[...].astype(jnp.float32)    # (1, D)
        beta = beta_ref[...].astype(jnp.float32)      # (1, D)

        issue(0, 0)
        for c in range(n_chunks):
            slot = c & 1
            if c + 1 < n_chunks:
                # Prefetch next chunk's rows while waiting/computing the current one.
                issue(c + 1, 1 - slot)
            wait(slot)

            tok = bufs[slot][...].astype(jnp.float32)                        # (CHUNK, D)
            pos = pos_ref[pl.ds(c * CHUNK, CHUNK), :].astype(jnp.float32)    # (CHUNK, D)
            x = tok + pos

            # LayerNorm (biased variance, eps=1e-5 — PyTorch semantics), f32 math.
            mean = jnp.mean(x, axis=-1, keepdims=True)
            xc = x - mean
            var = jnp.mean(xc * xc, axis=-1, keepdims=True)
            inv = lax.rsqrt(var + 1e-5)
            y = xc * inv * gamma + beta

            # TODO(synk): dropout(p=0.1) omitted — forward implemented in
            # eval/inference mode (identity).
            out_ref[pl.ds(c * CHUNK, CHUNK), :] = y.astype(out_ref.dtype)

    return kernel


def roberta_embedding(input_ids, tok_table, pos_table, gamma, beta,
                      *, rows_per_tile=None, rows_per_chunk=16):
    B, S = input_ids.shape
    vocab, D = tok_table.shape
    max_len = pos_table.shape[0]
    assert S <= max_len, "sequence length must not exceed max_len"

    # Pick the largest sublane-aligned tile (<=512 rows) that divides S.
    if rows_per_tile is None:
        TS = S
        for cand in (512, 256, 128, 64, 32, 16, 8):
            if S % cand == 0:
                TS = cand
                break
    else:
        TS = rows_per_tile
    CHUNK = min(rows_per_chunk, TS)
    assert S % TS == 0, "S must be a multiple of rows_per_tile"
    assert TS % CHUNK == 0, "rows_per_tile must be a multiple of rows_per_chunk"
    assert TS % 8 == 0 and CHUNK % 8 == 0, "tiles must be sublane (8) aligned"
    assert vocab >= CHUNK, "vocab must be at least rows_per_chunk"
    NJ = S // TS

    out_dtype = tok_table.dtype                 # bf16 tables -> bf16 output
    ids = input_ids.reshape(-1).astype(jnp.int32)   # (B*S,) -> SMEM scalar prefetch
    gamma2 = gamma.reshape(1, D)
    beta2 = beta.reshape(1, D)

    kernel = _make_embed_ln_kernel(TS, CHUNK, S)

    tok_bytes = jnp.dtype(tok_table.dtype).itemsize
    pos_bytes = jnp.dtype(pos_table.dtype).itemsize
    out_bytes = jnp.dtype(out_dtype).itemsize

    # Scoped-VMEM requirement (pos + out double-buffered, 2 gather buffers).
    need = (2 * TS * D * (pos_bytes + out_bytes)
            + 2 * CHUNK * D * tok_bytes
            + 4 * D * 4
            + (1 << 20))
    vmem_limit = int(min(64 << 20, max(2 * need, 16 << 20)))

    cost = pl.CostEstimate(
        flops=10 * B * S * D,
        transcendentals=B * S,
        bytes_accessed=(B * S * 4
                        + B * S * D * tok_bytes      # token gather
                        + S * D * pos_bytes          # pos read once per tile
                        + 2 * D * 4                  # gamma / beta
                        + B * S * D * out_bytes))    # output

    out_flat = pl.pallas_call(
        kernel,
        out_shape=jax.ShapeDtypeStruct((B * S, D), out_dtype),
        grid_spec=pltpu.PrefetchScalarGridSpec(
            num_scalar_prefetch=1,
            grid=(NJ, B),                            # batch innermost: pos block resident
            in_specs=[
                # token table stays in HBM; rows are DMA-gathered in-kernel
                pl.BlockSpec(memory_space=pl.ANY),
                # position embeddings: contiguous (TS, D) slice, constant over b
                pl.BlockSpec((TS, D), lambda j, b, ids: (j, 0)),
                # LayerNorm gamma / beta: same (1, D) block every step
                pl.BlockSpec((1, D), lambda j, b, ids: (0, 0)),
                pl.BlockSpec((1, D), lambda j, b, ids: (0, 0)),
            ],
            out_specs=pl.BlockSpec((TS, D), lambda j, b, ids: (b * NJ + j, 0)),
            scratch_shapes=[
                pltpu.VMEM((CHUNK, D), tok_table.dtype),   # gather buffer, slot 0
                pltpu.VMEM((CHUNK, D), tok_table.dtype),   # gather buffer, slot 1
                pltpu.SemaphoreType.DMA((2,)),             # one sem per slot
            ],
        ),
        compiler_params=pltpu.CompilerParams(
            dimension_semantics=("parallel", "parallel"),
            vmem_limit_bytes=vmem_limit),
        cost_estimate=cost,
    )(ids, tok_table, pos_table, gamma2, beta2)

    return out_flat.reshape(B, S, D)


if __name__ == "__main__":
    # Small, deterministic shapes consistent with the module.
    B, S, D = 2, 8, 32
    vocab_size, max_len = 64, 16

    key = jax.random.PRNGKey(0)
    k_ids, k_tok, k_pos = jax.random.split(key, 3)

    input_ids = jax.random.randint(k_ids, (B, S), 0, vocab_size, dtype=jnp.int32)
    # nn.Embedding default init: N(0, 1); LayerNorm: gamma=1, beta=0.
    tok_table = jax.random.normal(k_tok, (vocab_size, D), dtype=jnp.float32)
    pos_table = jax.random.normal(k_pos, (max_len, D), dtype=jnp.float32)
    gamma = jnp.ones((D,), jnp.float32)
    beta = jnp.zeros((D,), jnp.float32)

    out = roberta_embedding(input_ids, tok_table, pos_table, gamma, beta)
    jax.block_until_ready(out)

    # Pure-JAX reference for a correctness sanity check.
    ref = tok_table[input_ids] + pos_table[jnp.arange(S)][None, :, :]
    mu = ref.mean(-1, keepdims=True)
    var = ((ref - mu) ** 2).mean(-1, keepdims=True)
    ref = (ref - mu) / jnp.sqrt(var + 1e-5) * gamma + beta
    assert out.shape == (B, S, D)
    assert jnp.allclose(out.astype(jnp.float32), ref, atol=1e-5), \
        "Pallas kernel mismatch vs reference"

    print("KERNEL_OK")
</pallas_src>

<mosaic_0001>
module attributes {stable_mosaic.version = 11 : i64} {
  func.func @kernel(%arg0: i32, %arg1: i32, %arg2: memref<16xi32, #tpu.memory_space<smem>>, %arg3: memref<64x32xf32, #tpu.memory_space<any>>, %arg4: memref<8x32xf32, #tpu.memory_space<vmem>>, %arg5: memref<1x32xf32, #tpu.memory_space<vmem>>, %arg6: memref<1x32xf32, #tpu.memory_space<vmem>>, %arg7: memref<8x32xf32, #tpu.memory_space<vmem>>, %arg8: memref<8x32xf32, #tpu.memory_space<vmem>>, %arg9: memref<8x32xf32, #tpu.memory_space<vmem>>, %arg10: memref<2x!tpu.dma_semaphore, #tpu.memory_space<semaphore_mem>>) attributes {dimension_semantics = [#tpu.dimension_semantics<parallel>, #tpu.dimension_semantics<parallel>], iteration_bounds = array<i64: 1, 2>, scalar_prefetch = 1 : i64, scratch_operands = 3 : i64, tpu.core_type = #tpu.core_type<tc>, window_params = [{}, {transform_indices = @transform_1, window_bounds = array<i64: 8, 32>}, {pipeline_mode = #tpu.pipeline_mode<synchronous>, transform_indices = @transform_2, window_bounds = array<i64: 1, 32>}, {pipeline_mode = #tpu.pipeline_mode<synchronous>, transform_indices = @transform_3, window_bounds = array<i64: 1, 32>}, {transform_indices = @transform_4, window_bounds = array<i64: 8, 32>}]} {
    %c8_i32 = arith.constant 8 : i32
    %0 = arith.muli %arg1, %c8_i32 : i32
    %c8_i32_0 = arith.constant 8 : i32
    %1 = arith.muli %arg0, %c8_i32_0 : i32
    %2 = arith.addi %0, %1 : i32
    %c0 = arith.constant 0 : index
    %c0_1 = arith.constant 0 : index
    %3 = vector.load %arg5[%c0, %c0_1] : memref<1x32xf32, #tpu.memory_space<vmem>>, vector<1x32xf32>
    %c0_2 = arith.constant 0 : index
    %c0_3 = arith.constant 0 : index
    %4 = vector.load %arg6[%c0_2, %c0_3] : memref<1x32xf32, #tpu.memory_space<vmem>>, vector<1x32xf32>
    %c0_i32 = arith.constant 0 : i32
    %5 = arith.addi %2, %c0_i32 : i32
    %c0_i32_4 = arith.constant 0 : i32
    %6 = arith.addi %5, %c0_i32_4 : i32
    %7 = arith.index_cast %6 : i32 to index
    %8 = memref.load %arg2[%7] : memref<16xi32, #tpu.memory_space<smem>>
    %c0_i32_5 = arith.constant 0 : i32
    %c0_i32_6 = arith.constant 0 : i32
    %9 = tpu.memref_slice %arg3[%8, %c0_i32_6] : memref<64x32xf32, #tpu.memory_space<any>> -> memref<1x32xf32, #tpu.memory_space<any>>
    %c0_i32_7 = arith.constant 0 : i32
    %c0_i32_8 = arith.constant 0 : i32
    %10 = tpu.memref_slice %arg8[%c0_i32_7, %c0_i32_8] : memref<8x32xf32, #tpu.memory_space<vmem>> -> memref<1x32xf32, #tpu.memory_space<vmem>>
    %11 = tpu.memref_slice %arg10[%c0_i32_5] : memref<2x!tpu.dma_semaphore, #tpu.memory_space<semaphore_mem>> -> memref<1x!tpu.dma_semaphore, #tpu.memory_space<semaphore_mem>>
    %12 = tpu.memref_squeeze %11 : memref<1x!tpu.dma_semaphore, #tpu.memory_space<semaphore_mem>> -> memref<!tpu.dma_semaphore, #tpu.memory_space<semaphore_mem>>
    tpu.enqueue_dma source(%9 : memref<1x32xf32, #tpu.memory_space<any>>) target(%10 : memref<1x32xf32, #tpu.memory_space<vmem>>) target_semaphore(%12 : memref<!tpu.dma_semaphore, #tpu.memory_space<semaphore_mem>>)
    %c1_i32 = arith.constant 1 : i32
    %13 = arith.addi %5, %c1_i32 : i32
    %14 = arith.index_cast %13 : i32 to index
    %15 = memref.load %arg2[%14] : memref<16xi32, #tpu.memory_space<smem>>
    %c0_i32_9 = arith.constant 0 : i32
    %c0_i32_10 = arith.constant 0 : i32
    %16 = tpu.memref_slice %arg3[%15, %c0_i32_10] : memref<64x32xf32, #tpu.memory_space<any>> -> memref<1x32xf32, #tpu.memory_space<any>>
    %c1_i32_11 = arith.constant 1 : i32
    %c0_i32_12 = arith.constant 0 : i32
    %17 = tpu.memref_slice %arg8[%c1_i32_11, %c0_i32_12] : memref<8x32xf32, #tpu.memory_space<vmem>> -> memref<1x32xf32, #tpu.memory_space<vmem>>
    %18 = tpu.memref_slice %arg10[%c0_i32_9] : memref<2x!tpu.dma_semaphore, #tpu.memory_space<semaphore_mem>> -> memref<1x!tpu.dma_semaphore, #tpu.memory_space<semaphore_mem>>
    %19 = tpu.memref_squeeze %18 : memref<1x!tpu.dma_semaphore, #tpu.memory_space<semaphore_mem>> -> memref<!tpu.dma_semaphore, #tpu.memory_space<semaphore_mem>>
    tpu.enqueue_dma source(%16 : memref<1x32xf32, #tpu.memory_space<any>>) target(%17 : memref<1x32xf32, #tpu.memory_space<vmem>>) target_semaphore(%19 : memref<!tpu.dma_semaphore, #tpu.memory_space<semaphore_mem>>)
    %c2_i32 = arith.constant 2 : i32
    %20 = arith.addi %5, %c2_i32 : i32
    %21 = arith.index_cast %20 : i32 to index
    %22 = memref.load %arg2[%21] : memref<16xi32, #tpu.memory_space<smem>>
    %c0_i32_13 = arith.constant 0 : i32
    %c0_i32_14 = arith.constant 0 : i32
    %23 = tpu.memref_slice %arg3[%22, %c0_i32_14] : memref<64x32xf32, #tpu.memory_space<any>> -> memref<1x32xf32, #tpu.memory_space<any>>
    %c2_i32_15 = arith.constant 2 : i32
    %c0_i32_16 = arith.constant 0 : i32
    %24 = tpu.memref_slice %arg8[%c2_i32_15, %c0_i32_16] : memref<8x32xf32, #tpu.memory_space<vmem>> -> memref<1x32xf32, #tpu.memory_space<vmem>>
    %25 = tpu.memref_slice %arg10[%c0_i32_13] : memref<2x!tpu.dma_semaphore, #tpu.memory_space<semaphore_mem>> -> memref<1x!tpu.dma_semaphore, #tpu.memory_space<semaphore_mem>>
    %26 = tpu.memref_squeeze %25 : memref<1x!tpu.dma_semaphore, #tpu.memory_space<semaphore_mem>> -> memref<!tpu.dma_semaphore, #tpu.memory_space<semaphore_mem>>
    tpu.enqueue_dma source(%23 : memref<1x32xf32, #tpu.memory_space<any>>) target(%24 : memref<1x32xf32, #tpu.memory_space<vmem>>) target_semaphore(%26 : memref<!tpu.dma_semaphore, #tpu.memory_space<semaphore_mem>>)
    %c3_i32 = arith.constant 3 : i32
    %27 = arith.addi %5, %c3_i32 : i32
    %28 = arith.index_cast %27 : i32 to index
    %29 = memref.load %arg2[%28] : memref<16xi32, #tpu.memory_space<smem>>
    %c0_i32_17 = arith.constant 0 : i32
    %c0_i32_18 = arith.constant 0 : i32
    %30 = tpu.memref_slice %arg3[%29, %c0_i32_18] : memref<64x32xf32, #tpu.memory_space<any>> -> memref<1x32xf32, #tpu.memory_space<any>>
    %c3_i32_19 = arith.constant 3 : i32
    %c0_i32_20 = arith.constant 0 : i32
    %31 = tpu.memref_slice %arg8[%c3_i32_19, %c0_i32_20] : memref<8x32xf32, #tpu.memory_space<vmem>> -> memref<1x32xf32, #tpu.memory_space<vmem>>
    %32 = tpu.memref_slice %arg10[%c0_i32_17] : memref<2x!tpu.dma_semaphore, #tpu.memory_space<semaphore_mem>> -> memref<1x!tpu.dma_semaphore, #tpu.memory_space<semaphore_mem>>
    %33 = tpu.memref_squeeze %32 : memref<1x!tpu.dma_semaphore, #tpu.memory_space<semaphore_mem>> -> memref<!tpu.dma_semaphore, #tpu.memory_space<semaphore_mem>>
    tpu.enqueue_dma source(%30 : memref<1x32xf32, #tpu.memory_space<any>>) target(%31 : memref<1x32xf32, #tpu.memory_space<vmem>>) target_semaphore(%33 : memref<!tpu.dma_semaphore, #tpu.memory_space<semaphore_mem>>)
    %c4_i32 = arith.constant 4 : i32
    %34 = arith.addi %5, %c4_i32 : i32
    %35 = arith.index_cast %34 : i32 to index
    %36 = memref.load %arg2[%35] : memref<16xi32, #tpu.memory_space<smem>>
    %c0_i32_21 = arith.constant 0 : i32
    %c0_i32_22 = arith.constant 0 : i32
    %37 = tpu.memref_slice %arg3[%36, %c0_i32_22] : memref<64x32xf32, #tpu.memory_space<any>> -> memref<1x32xf32, #tpu.memory_space<any>>
    %c4_i32_23 = arith.constant 4 : i32
    %c0_i32_24 = arith.constant 0 : i32
    %38 = tpu.memref_slice %arg8[%c4_i32_23, %c0_i32_24] : memref<8x32xf32, #tpu.memory_space<vmem>> -> memref<1x32xf32, #tpu.memory_space<vmem>>
    %39 = tpu.memref_slice %arg10[%c0_i32_21] : memref<2x!tpu.dma_semaphore, #tpu.memory_space<semaphore_mem>> -> memref<1x!tpu.dma_semaphore, #tpu.memory_space<semaphore_mem>>
    %40 = tpu.memref_squeeze %39 : memref<1x!tpu.dma_semaphore, #tpu.memory_space<semaphore_mem>> -> memref<!tpu.dma_semaphore, #tpu.memory_space<semaphore_mem>>
    tpu.enqueue_dma source(%37 : memref<1x32xf32, #tpu.memory_space<any>>) target(%38 : memref<1x32xf32, #tpu.memory_space<vmem>>) target_semaphore(%40 : memref<!tpu.dma_semaphore, #tpu.memory_space<semaphore_mem>>)
    %c5_i32 = arith.constant 5 : i32
    %41 = arith.addi %5, %c5_i32 : i32
    %42 = arith.index_cast %41 : i32 to index
    %43 = memref.load %arg2[%42] : memref<16xi32, #tpu.memory_space<smem>>
    %c0_i32_25 = arith.constant 0 : i32
    %c0_i32_26 = arith.constant 0 : i32
    %44 = tpu.memref_slice %arg3[%43, %c0_i32_26] : memref<64x32xf32, #tpu.memory_space<any>> -> memref<1x32xf32, #tpu.memory_space<any>>
    %c5_i32_27 = arith.constant 5 : i32
    %c0_i32_28 = arith.constant 0 : i32
    %45 = tpu.memref_slice %arg8[%c5_i32_27, %c0_i32_28] : memref<8x32xf32, #tpu.memory_space<vmem>> -> memref<1x32xf32, #tpu.memory_space<vmem>>
    %46 = tpu.memref_slice %arg10[%c0_i32_25] : memref<2x!tpu.dma_semaphore, #tpu.memory_space<semaphore_mem>> -> memref<1x!tpu.dma_semaphore, #tpu.memory_space<semaphore_mem>>
    %47 = tpu.memref_squeeze %46 : memref<1x!tpu.dma_semaphore, #tpu.memory_space<semaphore_mem>> -> memref<!tpu.dma_semaphore, #tpu.memory_space<semaphore_mem>>
    tpu.enqueue_dma source(%44 : memref<1x32xf32, #tpu.memory_space<any>>) target(%45 : memref<1x32xf32, #tpu.memory_space<vmem>>) target_semaphore(%47 : memref<!tpu.dma_semaphore, #tpu.memory_space<semaphore_mem>>)
    %c6_i32 = arith.constant 6 : i32
    %48 = arith.addi %5, %c6_i32 : i32
    %49 = arith.index_cast %48 : i32 to index
    %50 = memref.load %arg2[%49] : memref<16xi32, #tpu.memory_space<smem>>
    %c0_i32_29 = arith.constant 0 : i32
    %c0_i32_30 = arith.constant 0 : i32
    %51 = tpu.memref_slice %arg3[%50, %c0_i32_30] : memref<64x32xf32, #tpu.memory_space<any>> -> memref<1x32xf32, #tpu.memory_space<any>>
    %c6_i32_31 = arith.constant 6 : i32
    %c0_i32_32 = arith.constant 0 : i32
    %52 = tpu.memref_slice %arg8[%c6_i32_31, %c0_i32_32] : memref<8x32xf32, #tpu.memory_space<vmem>> -> memref<1x32xf32, #tpu.memory_space<vmem>>
    %53 = tpu.memref_slice %arg10[%c0_i32_29] : memref<2x!tpu.dma_semaphore, #tpu.memory_space<semaphore_mem>> -> memref<1x!tpu.dma_semaphore, #tpu.memory_space<semaphore_mem>>
    %54 = tpu.memref_squeeze %53 : memref<1x!tpu.dma_semaphore, #tpu.memory_space<semaphore_mem>> -> memref<!tpu.dma_semaphore, #tpu.memory_space<semaphore_mem>>
    tpu.enqueue_dma source(%51 : memref<1x32xf32, #tpu.memory_space<any>>) target(%52 : memref<1x32xf32, #tpu.memory_space<vmem>>) target_semaphore(%54 : memref<!tpu.dma_semaphore, #tpu.memory_space<semaphore_mem>>)
    %c7_i32 = arith.constant 7 : i32
    %55 = arith.addi %5, %c7_i32 : i32
    %56 = arith.index_cast %55 : i32 to index
    %57 = memref.load %arg2[%56] : memref<16xi32, #tpu.memory_space<smem>>
    %c0_i32_33 = arith.constant 0 : i32
    %c0_i32_34 = arith.constant 0 : i32
    %58 = tpu.memref_slice %arg3[%57, %c0_i32_34] : memref<64x32xf32, #tpu.memory_space<any>> -> memref<1x32xf32, #tpu.memory_space<any>>
    %c7_i32_35 = arith.constant 7 : i32
    %c0_i32_36 = arith.constant 0 : i32
    %59 = tpu.memref_slice %arg8[%c7_i32_35, %c0_i32_36] : memref<8x32xf32, #tpu.memory_space<vmem>> -> memref<1x32xf32, #tpu.memory_space<vmem>>
    %60 = tpu.memref_slice %arg10[%c0_i32_33] : memref<2x!tpu.dma_semaphore, #tpu.memory_space<semaphore_mem>> -> memref<1x!tpu.dma_semaphore, #tpu.memory_space<semaphore_mem>>
    %61 = tpu.memref_squeeze %60 : memref<1x!tpu.dma_semaphore, #tpu.memory_space<semaphore_mem>> -> memref<!tpu.dma_semaphore, #tpu.memory_space<semaphore_mem>>
    tpu.enqueue_dma source(%58 : memref<1x32xf32, #tpu.memory_space<any>>) target(%59 : memref<1x32xf32, #tpu.memory_space<vmem>>) target_semaphore(%61 : memref<!tpu.dma_semaphore, #tpu.memory_space<semaphore_mem>>)
    %c0_i32_37 = arith.constant 0 : i32
    %c0_i32_38 = arith.constant 0 : i32
    %c0_i32_39 = arith.constant 0 : i32
    %62 = tpu.memref_slice %arg3[%c0_i32_38, %c0_i32_39] : memref<64x32xf32, #tpu.memory_space<any>> -> memref<8x32xf32, #tpu.memory_space<any>>
    %63 = tpu.memref_slice %arg10[%c0_i32_37] : memref<2x!tpu.dma_semaphore, #tpu.memory_space<semaphore_mem>> -> memref<1x!tpu.dma_semaphore, #tpu.memory_space<semaphore_mem>>
    %64 = tpu.memref_squeeze %63 : memref<1x!tpu.dma_semaphore, #tpu.memory_space<semaphore_mem>> -> memref<!tpu.dma_semaphore, #tpu.memory_space<semaphore_mem>>
    tpu.wait_dma2 semaphore(%64 : memref<!tpu.dma_semaphore, #tpu.memory_space<semaphore_mem>>) src(%62 : memref<8x32xf32, #tpu.memory_space<any>>) dst(%arg8 : memref<8x32xf32, #tpu.memory_space<vmem>>)
    %c0_40 = arith.constant 0 : index
    %c0_41 = arith.constant 0 : index
    %65 = vector.load %arg8[%c0_40, %c0_41] : memref<8x32xf32, #tpu.memory_space<vmem>>, vector<8x32xf32>
    %c0_42 = arith.constant 0 : index
    %c0_43 = arith.constant 0 : index
    %66 = vector.load %arg4[%c0_42, %c0_43] : memref<8x32xf32, #tpu.memory_space<vmem>>, vector<8x32xf32>
    %67 = arith.addf %65, %66 : vector<8x32xf32>
    %cst = arith.constant dense<0.000000e+00> : vector<8xf32>
    %68 = vector.multi_reduction <add>, %67, %cst [1] : vector<8x32xf32> to vector<8xf32>
    %69 = vector.shape_cast %68 : vector<8xf32> to vector<8x1xf32>
    %cst_44 = arith.constant 3.200000e+01 : f32
    %70 = vector.broadcast %cst_44 : f32 to vector<8x1xf32>
    %71 = arith.divf %69, %70 : vector<8x1xf32>
    %72 = vector.broadcast %71 : vector<8x1xf32> to vector<8x32xf32>
    %73 = arith.subf %67, %72 : vector<8x32xf32>
    %74 = arith.mulf %73, %73 : vector<8x32xf32>
    %cst_45 = arith.constant dense<0.000000e+00> : vector<8xf32>
    %75 = vector.multi_reduction <add>, %74, %cst_45 [1] : vector<8x32xf32> to vector<8xf32>
    %76 = vector.shape_cast %75 : vector<8xf32> to vector<8x1xf32>
    %cst_46 = arith.constant 3.200000e+01 : f32
    %77 = vector.broadcast %cst_46 : f32 to vector<8x1xf32>
    %78 = arith.divf %76, %77 : vector<8x1xf32>
    %cst_47 = arith.constant 9.99999974E-6 : f32
    %79 = vector.broadcast %cst_47 : f32 to vector<8x1xf32>
    %80 = arith.addf %78, %79 : vector<8x1xf32>
    %81 = math.rsqrt %80 : vector<8x1xf32>
    %82 = vector.broadcast %81 : vector<8x1xf32> to vector<8x32xf32>
    %83 = arith.mulf %73, %82 : vector<8x32xf32>
    %84 = vector.broadcast %3 : vector<1x32xf32> to vector<8x32xf32>
    %85 = arith.mulf %83, %84 : vector<8x32xf32>
    %86 = vector.broadcast %4 : vector<1x32xf32> to vector<8x32xf32>
    %87 = arith.addf %85, %86 : vector<8x32xf32>
    %c0_48 = arith.constant 0 : index
    %c0_49 = arith.constant 0 : index
    %88 = vector.load %arg7[%c0_48, %c0_49] : memref<8x32xf32, #tpu.memory_space<vmem>>, vector<8x32xf32>
    tpu.vector_store %arg7[%c0_48, %c0_49], %87 {strides = array<i32>} : memref<8x32xf32, #tpu.memory_space<vmem>>, vector<8x32xf32>,
    return
  }
  func.func @transform_1(%arg0: i32, %arg1: i32, %arg2: memref<16xi32, #tpu.memory_space<smem>>) -> (i32, i32) {
    %c0_i32 = arith.constant 0 : i32
    %c0_i32_0 = arith.constant 0 : i32
    return %arg0, %c0_i32 : i32, i32
  }
  func.func @transform_2(%arg0: i32, %arg1: i32, %arg2: memref<16xi32, #tpu.memory_space<smem>>) -> (i32, i32) {
    %c0_i32 = arith.constant 0 : i32
    %c0_i32_0 = arith.constant 0 : i32
    %c0_i32_1 = arith.constant 0 : i32
    return %c0_i32, %c0_i32_0 : i32, i32
  }
  func.func @transform_3(%arg0: i32, %arg1: i32, %arg2: memref<16xi32, #tpu.memory_space<smem>>) -> (i32, i32) {
    %c0_i32 = arith.constant 0 : i32
    %c0_i32_0 = arith.constant 0 : i32
    %c0_i32_1 = arith.constant 0 : i32
    return %c0_i32, %c0_i32_0 : i32, i32
  }
  func.func @transform_4(%arg0: i32, %arg1: i32, %arg2: memref<16xi32, #tpu.memory_space<smem>>) -> (i32, i32) {
    %c1_i32 = arith.constant 1 : i32
    %0 = arith.muli %arg1, %c1_i32 : i32
    %1 = arith.addi %0, %arg0 : i32
    %c0_i32 = arith.constant 0 : i32
    %c0_i32_0 = arith.constant 0 : i32
    return %1, %c0_i32 : i32, i32
  }
}

</mosaic_0001>

<bundles_post_ra>
// kernel: tpu_custom_call.1
= control target key start
LH: loop header
LB: loop body
LE: loop exit
PB: predicated region body
PF: predicated region fallthrough
CT: control target
= control target key end

     0   :  { %s1182_s0 = inlined_call_operand.vmem [shape: s32[16], index: 0, kind: input, shape index: {}]   ;;  %s1183_s1 = inlined_call_operand.vmem [shape: f32[64,32], index: 1, kind: input, shape index: {}]   ;;  %s1184_s2 = inlined_call_operand.vmem [shape: f32[16,32], index: 2, kind: input, shape index: {}]   ;;  %s1185_s3 = inlined_call_operand.vmem [shape: f32[1,32], index: 3, kind: input, shape index: {}]   ;;  %s1186_s4 = inlined_call_operand.vmem [shape: f32[1,32], index: 4, kind: input, shape index: {}]   ;;  %s1187_s5 = inlined_call_operand.hbm [shape: f32[16,32], index: 5, kind: output, shape index: {}]  }
   0x1   :  { %s10_s20 = sshll.u32 %s1182_s0, 4  ;;  %s11_s20 = int_to_ptr.vmem [resolvable:$true] %s10_s20 }
   0x2   :  { %s895_s21 = scalar_lea.vmem %s11_s20, 16  ;;  %p900_p1 = scmp.lt.s32.totalorder %s11_s20, %s11_s20 }
   0x3   :  { %p896_p0 = scmp.ne.s32.totalorder %s11_s20, %s895_s21  ;;  %p901_p2 = scmp.lt.s32.totalorder %s895_s21, %s895_s21 }
   0x5   :  { %p902_p3 = por %p901_p2, %p900_p1 }
   0x7   :  { %p903_p4 = pnand %p902_p3, %p896_p0 }
   0x9   :  { %906 = shalt.err (!%p903_p4)  }
   0xa   :  { %s989_s22 = smov [#allocation6]  }
   0xb   :  { %13 = dma.vmem_to_smem %s11_s20, 16, %s989_s22, [#allocation5] }
   0xc   :  { %957 = dma.done.wait [#allocation5], 16 }
   0xd   :  { %958 = vsyncadd [#allocation5], 4294967280 }
   0xe   :  { %15 = sfence }
   0xf   :  { %16 = vsyncpa [#allocation8], 0 }
  0x10   :  { %18 = vsyncpa [#allocation8 + $0x1], 0  ;;  %s1024_s23 = smov 0   ;;  %s1026_s24 = smov 0  }
  0x11   :  { %s1028_s0 = smov 0   ;;  %s1030_s25 = smov 0  }
  0x12   :  { %s1032_s26 = smov 0   ;;  %s1034_s27 = smov 0  }
  0x13 LB: > { %s822_s28 = sadd.s32 4294967295, %s987_s27   ;;  %s823_s29 = sadd.s32 4294967294, %s987_s27   ;;  %s987_s27 = sphi %s1034_s27, %s24_s27   ;;  %s983_s26 = sphi %s1032_s26, %s1196_s26   ;;  %s979_s25 = sphi %s1030_s25, %s1195_s25   ;;  %s975_s0 = sphi %s1028_s0, %s1194_s0   ;;  %s971_s24 = sphi %s1026_s24, %s1193_s24   ;;  %s967_s23 = sphi %s1024_s23, %s1192_s23  }
  0x14   : > { %s33_s30 = sadd.s32 1, %s983_s26  ;;  %s113_s6 = sadd.s32 1, %s975_s0 }
  0x15   : > { %p34_p5 = scmp.ge.s32.totalorder %s33_s30, 2  ;;  %p123_p6 = scmp.ne.s32.totalorder %s975_s0, %s971_s24 }
  0x16   : > { %p124_p7 = scmp.eq.s32.totalorder %s822_s28, 1  ;;  %p129_p8 = scmp.ne.s32.totalorder %s971_s24, %s967_s23 }
  0x17   : > { %s1198_s30 = smov (%p34_p5, %s33_s30), 0  ;;  %p130_p10 = scmp.eq.s32.totalorder %s823_s29, 1 }
  0x18   : > { %p1064_p9 = por %p124_p7, %p123_p6  ;;  %s110_s8 = ssub.s32 %s983_s26, %s1198_s30 }
  0x19   : > { %p826_p11 = scmp.ge.s32.totalorder %s987_s27, 1  ;;  %p111_p12 = scmp.eq.s32.totalorder %s110_s8, 0 }
  0x1a   : > { %p1071_p13 = por %p130_p10, %p129_p8  ;;  %p161_p0 = scmp.lt.s32.totalorder %s987_s27, 3 }
  0x1b   : > { %s1077_s10 = scalar_select %p111_p12, %s975_s0, %s113_s6  }
  0x1c   : > { %p162_p1 = pnand %p826_p11, %p161_p0 }
  0x1d   : > { %s1188_s11 = sand.u32 (!%p162_p1), 1, %s971_s24   ;;  %s1081_s12 = sshll.u32 (!%p162_p1), %s979_s25, 3 }
  0x1e   : > { %165 = sbr.rel (%p162_p1) target bundleno = 440 (0x1b8), region = 32  ;;  %s1095_s17 = sshll.u32 (!%p162_p1), %s1188_s11, 3 }
  0x1f   : > { %s194_s18 = sld [smem:[#allocation6 + %s1081_s12]] (!%p162_p1)  ;;  %s183_s22 = scalar_lea.vmem (!%p162_p1), [#allocation7], %s1095_s17 }
  0x23   : > { %v1086_v0 = vld [vmem:[%s1185_s3] ss:$0 sm:$0xff] }
  0x24   : > { %v1091_v1 = vld [vmem:[%s1186_s4] ss:$0 sm:$0xff] }
  0x25   : > { %s195_s21 = scalar_lea.vmem %s1183_s1, %s194_s18 }
  0x26   : > { %v214_v2 = vld [vmem:[%s195_s21] sm:$0x1] }
  0x27   : > { %215 = vst [vmem:[#allocation2] sm:$0x1] %v214_v2 }
  0x28   : > { %241 = vsyncadd [#allocation4], 16  ;;  %s242_s28 = sadd.s32 1, %s1081_s12 }
  0x29   : > { %s243_s29 = sld [smem:[#allocation6 + %s242_s28]] }
  0x2f   : > { %s244_s13 = scalar_lea.vmem %s1183_s1, %s243_s29 }
  0x30   : > { %v264_v3 = vld [vmem:[%s244_s13] sm:$0x1] }
  0x31   : > { %265 = vst [vmem:[#allocation2 + $0x1] sm:$0x1] %v264_v3 }
  0x32   : > { %291 = vsyncadd [#allocation4], 16  ;;  %s292_s14 = sadd.s32 2, %s1081_s12 }
  0x33   : > { %s293_s15 = sld [smem:[#allocation6 + %s292_s14]] }
  0x39   : > { %s294_s18 = scalar_lea.vmem %s1183_s1, %s293_s15 }
  0x3a   : > { %v314_v4 = vld [vmem:[%s294_s18] sm:$0x1] }
  0x3b   : > { %315 = vst [vmem:[#allocation2 + $0x2] sm:$0x1] %v314_v4 }
  0x3c   : > { %341 = vsyncadd [#allocation4], 16  ;;  %s342_s20 = sadd.s32 3, %s1081_s12 }
  0x3d   : > { %s343_s21 = sld [smem:[#allocation6 + %s342_s20]] }
  0x43   : > { %s344_s29 = scalar_lea.vmem %s1183_s1, %s343_s21 }
  0x44   : > { %v364_v5 = vld [vmem:[%s344_s29] sm:$0x1] }
  0x45   : > { %365 = vst [vmem:[#allocation2 + $0x3] sm:$0x1] %v364_v5 }
  0x46   : > { %391 = vsyncadd [#allocation4], 16  ;;  %s392_s6 = sadd.s32 4, %s1081_s12 }
  0x47   : > { %s393_s8 = sld [smem:[#allocation6 + %s392_s6]] }
  0x4d   : > { %s394_s15 = scalar_lea.vmem %s1183_s1, %s393_s8 }
  0x4e   : > { %v414_v6 = vld [vmem:[%s394_s15] sm:$0x1] }
  0x4f   : > { %415 = vst [vmem:[#allocation2 + $0x4] sm:$0x1] %v414_v6 }
  0x50   : > { %441 = vsyncadd [#allocation4], 16  ;;  %s442_s16 = sadd.s32 5, %s1081_s12 }
  0x51   : > { %s443_s19 = sld [smem:[#allocation6 + %s442_s16]] }
  0x57   : > { %s444_s11 = scalar_lea.vmem %s1183_s1, %s443_s19 }
  0x58   : > { %v464_v7 = vld [vmem:[%s444_s11] sm:$0x1] }
  0x59   : > { %465 = vst [vmem:[#allocation2 + $0x5] sm:$0x1] %v464_v7 }
  0x5a   : > { %491 = vsyncadd [#allocation4], 16  ;;  %s492_s21 = sadd.s32 6, %s1081_s12 }
  0x5b   : > { %s493_s28 = sld [smem:[#allocation6 + %s492_s21]] }
  0x61   : > { %s494_s8 = scalar_lea.vmem %s1183_s1, %s493_s28 }
  0x62   : > { %v514_v8 = vld [vmem:[%s494_s8] sm:$0x1] }
  0x63   : > { %515 = vst [vmem:[#allocation2 + $0x6] sm:$0x1] %v514_v8 }
  0x64   : > { %541 = vsyncadd [#allocation4], 16  ;;  %s542_s13 = sadd.s32 7, %s1081_s12 }
  0x65   : > { %s543_s14 = sld [smem:[#allocation6 + %s542_s13]] }
  0x6b   : > { %s544_s19 = scalar_lea.vmem %s1183_s1, %s543_s14 }
  0x6c   : > { %v564_v9 = vld [vmem:[%s544_s19] sm:$0x1] }
  0x6d   : > { %565 = vst [vmem:[#allocation2 + $0x7] sm:$0x1] %v564_v9 }
  0x6e   : > { %591 = vsyncadd [#allocation4], 16 }
  0x6f   : > { %959 = dma.done.wait [#allocation4], 128 }
  0x70   : > { %960 = vsyncadd [#allocation4], 4294967168  ;;  %v596_v11 = vld [vmem:[%s1184_s2] sm:$0xff]  ;;  %vm598_vm0 = vcmask 261120   ;;  %s832_s12 = sshll.u32 %s979_s25, 7  ;;  %s643_s11 = sshll.u32 %s183_s22, 4  ;;  %s644_s11 = int_to_ptr.vmem [resolvable:$true] %s643_s11 }
  0x71   : > { %s641_s29 = scalar_lea.hbm %s1187_s5, %s832_s12  ;;  %s1191_s6 = sand.u32 1, %s971_s24  }
  0x72   : > { %s629_s8 = scalar_lea.sflag [#allocation8], %s1191_s6  ;;  %s907_s13 = scalar_lea.vmem %s644_s11, 128 }
  0x73   : > { %p908_p2 = scmp.ne.s32.totalorder %s644_s11, %s907_s13  ;;  %s990_s25 = smov [#allocation7]  }
  0x74   : > { %v595_v10 = vld [vmem:[#allocation2] sm:$0xff]  ;;  %s911_s14 = sshll.u32 %s990_s25, 4  ;;  %s912_s14 = int_to_ptr.vmem [resolvable:$false] %s911_s14 }
  0x75   : > { %v597_v12 = vadd.f32 %v596_v11, %v595_v10  ;;  %p909_p3 = pnand %p908_p2, %p1064_p9  ;;  %s913_s15 = scalar_lea.vmem %s912_s14, 256 }
  0x76   : > { %p914_p5 = scmp.lt.s32.totalorder %s644_s11, %s912_s14  ;;  %p915_p6 = scmp.lt.s32.totalorder %s913_s15, %s907_s13 }
  0x77   : > { %v599_v13 = vsel %vm598_vm0, %v597_v12, 0.0  ;;  %p910_p4 = pneg %p909_p3 }
  0x78   : > { %600 = vadd.xlane.f32.xlu0 %v599_v13  ;;  %p916_p7 = por %p915_p6, %p914_p5 }
  0x7a   : > { %p917_p8 = pnand %p916_p7, %p910_p4 }
 0x101   : > { %v601_v14 = vpop.xlane.xlu0 %600 }
 0x102   : > { %v603_v15 = vmul.f32 0.03125, %v601_v14 }
 0x104   : > { %v604_v16 = vsub.f32 %v597_v12, %v603_v15 }
 0x106   : > { %v605_v17 = vmul.f32 %v604_v16, %v604_v16 }
 0x108   : > { %v606_v18 = vsel %vm598_vm0, %v605_v17, 0.0 }
 0x109   : > { %607 = vadd.xlane.f32.xlu0 %v606_v18 }
 0x192   : > { %v608_v19 = vpop.xlane.xlu0 %607 }
 0x193   : > { %v609_v20 = vmul.f32 0.03125, %v608_v19 }
 0x195   : > { %v610_v21 = vadd.f32 1e-05, %v609_v20 }
 0x197   : > { %893 = vrsqrt.f32 %v610_v21 }
 0x1a4   : > { %v894_v22 = vpop.eup %893 }
 0x1a5   : > { %v612_v23 = vmul.f32 %v894_v22, %v604_v16 }
 0x1a7   : > { %v619_v24 = vmul.f32 %v1086_v0, %v612_v23 }
 0x1a9   : > { %v626_v25 = vadd.f32 %v1091_v1, %v619_v24 }
 0x1ab   : > { %627 = vst.msk [vmem:[%s183_s22] sm:$0xff] %vm598_vm0, %v626_v25 }
 0x1ac   : > { %920 = shalt.err (!%p917_p8)
}
 0x1ad   : > { %s921_s16 = scalar_lea.hbm %s641_s29, 128  ;;  %s925_s19 = scalar_lea.hbm %s1187_s5, 256 }
 0x1ae   : > { %p922_p10 = scmp.ne.s32.totalorder %s641_s29, %s921_s16  ;;  %p926_p0 = scmp.lt.s32.totalorder %s641_s29, %s1187_s5 }
 0x1af   : > { %p927_p1 = scmp.lt.s32.totalorder %s925_s19, %s921_s16 }
 0x1b0   : > { %p923_p11 = pnand %p922_p10, %p1064_p9 }
 0x1b1   : > { %p928_p2 = por %p927_p1, %p926_p0 }
 0x1b2   : > { %p924_p12 = pneg %p923_p11 }
 0x1b4   : > { %p929_p3 = pnand %p928_p2, %p924_p12 }
 0x1b6   : > { %932 = shalt.err (!%p929_p3)
}
 0x1b7   : > { %837 = dma.vmem_to_hbm [thread:$0]  (%p1064_p9), %s644_s11, 128, %s641_s29, %s629_s8  }
 0x1b8 PF: > { %p843_p4 = scmp.ge.s32.totalorder %s987_s27, 2  ;;  %s655_s12 = sand.u32 1, %s967_s23  }
 0x1b9   : > { %s656_s21 = scalar_lea.sflag [#allocation8], %s655_s12 }
 0x1ba   : > { %p840_p5 = pnand %p843_p4, %p1071_p13 }
 0x1bc   : > { %p841_p6 = pneg %p840_p5 }
 0x1be   : > { %962 = dma.done.wait (%p841_p6), %s656_s21, 128  }
 0x1bf   : > { %964 = vsyncadd (%p841_p6), %s656_s21, 4294967168  ;;  %s24_s27 = sadd.s32 1, %s987_s27   ;;  %s1192_s23 = smov %s971_s24 }
 0x1c0   : > { %p21_p7 = scmp.ge.s32.totalorder %s24_s27, 4   ;;  %s1193_s24 = smov %s975_s0 }
 0x1c1   : > { %s1194_s0 = smov %s1077_s10  ;;  %s1195_s25 = smov %s983_s26 }
 0x1c2   : > { %s1196_s26 = smov %s1198_s30  ;;  %23 = sbr.rel (!%p21_p7) target bundleno = 19 (0x13), region = 403 }
 0x1c7   :  { %661 = vsyncpa [#allocation8], 1 }
 0x1c8   :  { %663 = vsyncpa [#allocation8 + $0x1], 1 }
 0x1c9   :  { %664 = vsyncmov [#allocation4] }
 0x1cc   :  { %s665_s7 = vpop.sfrf %664 }
 0x1cd   :  { %p835_p9 = scmp.ne.s32.totalorder %s665_s7, 0 }
 0x1cf   :  { %669 = shalt.err (%p835_p9)  }
 0x1d0   :  { %671 = vsyncmov [#allocation4 + $0x1] }
 0x1d3   :  { %s672_s9 = vpop.sfrf %671 }
 0x1d4   :  { %p836_p13 = scmp.ne.s32.totalorder %s672_s9, 0 }
 0x1d6   :  { %676 = shalt.err (%p836_p13)  }

</bundles_post_ra>
